<compile_context>
chip_gen: v7x
topology: tpu7x:2x2x1
jax: 0.10.0
libtpu: 0.0.40
codegen_flags: <defaults>
</compile_context>

<pallas_src>
import math

import jax
import jax.numpy as jnp
from jax import lax
from jax.experimental import pallas as pl
from jax.experimental.pallas import tpu as pltpu


def _round_up(x: int, m: int) -> int:
    return ((x + m - 1) // m) * m


def _vmem_cap_bytes() -> int:
    """Generation-aware scoped-VMEM cap (leave ~25% headroom for Mosaic)."""
    try:
        phys = int(pltpu.get_tpu_info().vmem_capacity_bytes)
    except Exception:
        return 48 * 1024 * 1024          # conservative: fits v7x's 64 MiB/TC
    return min(100 * 1024 * 1024, (phys * 3) // 4)


def _bilinear_kernel(x_ref, w_ref, y_ref, o_ref, xw_ref):
    """One (batch b, R1-tile i, R2-tile j) grid step.

    x_ref : (1, TM, D1)       X tile   (index_map ignores j -> DMA'd once per (b,i))
    w_ref : (D1, D2)          W        (constant index -> DMA'd once, single buffer)
    y_ref : (1, TN, D2)       Y tile   (streams along j)
    o_ref : (1, TM, TN)       output tile
    xw_ref: (TM, D2) f32/bf16 VMEM cache of X @ W, refreshed only when j == 0
    """
    j = pl.program_id(2)

    @pl.when(j == 0)
    def _():
        # f32 MXU accumulation; single cast into the scratch dtype (bf16 when
        # the caller opted into the reduced-precision path).
        xw_ref[...] = jnp.dot(
            x_ref[0], w_ref[...],
            preferred_element_type=jnp.float32).astype(xw_ref.dtype)

    # NT contraction: contract the last dim of both operands -> feeds the MXU
    # directly, no materialized transpose of y, no per-j casts.
    out = lax.dot_general(
        xw_ref[...], y_ref[0],
        dimension_numbers=(((1,), (1,)), ((), ())),
        preferred_element_type=jnp.float32)
    o_ref[0] = out.astype(o_ref.dtype)


def bilinear_matrix_attention(matrix_1, matrix_2, weight, *,
                              tile_m: int = 512, tile_n: int = 256,
                              use_bf16: bool = False):
    """X W Y^T, batched over the leading dim, computed inside a Pallas kernel."""
    B, R1, D1 = matrix_1.shape
    B2, R2, D2 = matrix_2.shape
    assert B == B2
    assert weight.shape == (D1, D2)
    out_dtype = matrix_1.dtype

    if use_bf16:
        # Precision-reducing fast path: both contractions run with bf16 MXU
        # operands (f32 accumulation), and the cached X@W intermediate is held
        # in bf16, so rounding error compounds across the two matmuls
        # (~1e-2 rel).  Opt-in only.
        matrix_1 = matrix_1.astype(jnp.bfloat16)
        matrix_2 = matrix_2.astype(jnp.bfloat16)
        weight = weight.astype(jnp.bfloat16)

    # --- tile sizes: TM multiple of 8 (sublane), TN multiple of 128 (lane-dense
    # output stores), contraction dims padded to 128 for MXU alignment.
    tm = min(tile_m, _round_up(R1, 8))
    tn = min(tile_n, _round_up(R2, 128))

    # v7x has 2 TensorCores; make sure the "parallel" (b, i) axes expose at
    # least 2 work units so the second core isn't idle (harmless elsewhere).
    while B * (-(-R1 // tm)) < 2 and tm > 8:
        tm = max(8, _round_up(tm // 2, 8))

    r1p, r2p = _round_up(R1, tm), _round_up(R2, tn)
    d1p, d2p = _round_up(D1, 128), _round_up(D2, 128)

    # Skip the pad copies entirely when already aligned (common fast path).
    x = matrix_1 if (R1, D1) == (r1p, d1p) else jnp.pad(
        matrix_1, ((0, 0), (0, r1p - R1), (0, d1p - D1)))
    y = matrix_2 if (R2, D2) == (r2p, d2p) else jnp.pad(
        matrix_2, ((0, 0), (0, r2p - R2), (0, d2p - D2)))
    w = weight if (D1, D2) == (d1p, d2p) else jnp.pad(
        weight, ((0, d1p - D1), (0, d2p - D2)))

    grid = (B, r1p // tm, r2p // tn)
    n_i, n_j = grid[1], grid[2]

    xw_dtype = jnp.bfloat16 if use_bf16 else jnp.float32
    in_bytes = jnp.dtype(x.dtype).itemsize
    out_bytes = jnp.dtype(out_dtype).itemsize

    # Deeper Y buffering only when the per-j compute is small enough for the
    # Y DMA to be exposed and there are enough j steps for it to matter.
    y_buffers = 3 if (d2p <= 256 and tm <= 256 and n_j >= 3) else 2

    # Advisory cost estimate (Y is re-streamed once per R1 tile; W read once).
    flops = 2 * B * (r1p * d1p * d2p + r1p * d2p * r2p)
    bytes_accessed = (B * r1p * d1p              # X: once per (b, i)
                      + B * r2p * d2p * n_i      # Y: once per (b, i, *)
                      + d1p * d2p) * in_bytes    # W: once
    bytes_accessed += B * r1p * r2p * out_bytes  # output written once
    cost = pl.CostEstimate(flops=flops, transcendentals=0,
                           bytes_accessed=bytes_accessed)

    vmem_cap = _vmem_cap_bytes()

    def _call(w_buffers: int, y_bufs: int):
        w_kwargs = {"pipeline_mode": pl.Buffered(w_buffers)} if w_buffers != 2 else {}
        y_kwargs = {"pipeline_mode": pl.Buffered(y_bufs)} if y_bufs != 2 else {}

        in_specs = [
            # X tile: independent of j -> re-DMA'd only when (b, i) changes.
            pl.BlockSpec((1, tm, d1p), lambda b, i, j: (b, i, 0)),
            # W: constant block index -> DMA'd once; single pipeline buffer.
            pl.BlockSpec((d1p, d2p), lambda b, i, j: (0, 0), **w_kwargs),
            # Y tile: streams along the innermost j axis.
            pl.BlockSpec((1, tn, d2p), lambda b, i, j: (b, j, 0), **y_kwargs),
        ]

        vmem_est = (2 * tm * d1p * in_bytes
                    + w_buffers * d1p * d2p * in_bytes
                    + y_bufs * tn * d2p * in_bytes
                    + 2 * tm * tn * out_bytes
                    + tm * d2p * jnp.dtype(xw_dtype).itemsize)
        vmem_limit = int(min(vmem_cap,
                             max(int(1.5 * vmem_est), 16 * 1024 * 1024)))

        return pl.pallas_call(
            _bilinear_kernel,
            out_shape=jax.ShapeDtypeStruct((B, r1p, r2p), out_dtype),
            grid_spec=pltpu.PrefetchScalarGridSpec(
                num_scalar_prefetch=0,
                grid=grid,
                in_specs=in_specs,
                out_specs=pl.BlockSpec((1, tm, tn), lambda b, i, j: (b, i, j)),
                scratch_shapes=[pltpu.VMEM((tm, d2p), xw_dtype)],
            ),
            compiler_params=pltpu.CompilerParams(
                # j ("arbitrary") MUST stay innermost: the xw scratch caching
                # relies on sequential j starting at 0 for every (b, i).
                dimension_semantics=("parallel", "parallel", "arbitrary"),
                vmem_limit_bytes=vmem_limit,
            ),
            cost_estimate=cost,
        )(x, w, y)

    try:
        out_padded = _call(1, y_buffers)
    except Exception:
        # Fallback for JAX versions without BlockSpec pipeline_mode support.
        out_padded = _call(2, 2)

    if (r1p, r2p) != (R1, R2):
        out_padded = out_padded[:, :R1, :R2]
    return out_padded


def init_params(key, matrix_1_dim, matrix_2_dim):
    """Deterministic xavier_uniform_ init for the weight, zero bias."""
    bound = math.sqrt(6.0 / (matrix_1_dim + matrix_2_dim))
    w = jax.random.uniform(
        key, (matrix_1_dim, matrix_2_dim), dtype=jnp.float32,
        minval=-bound, maxval=bound,
    )
    b = jnp.zeros((1,), dtype=jnp.float32)  # unused in forward (matches reference)
    return w, b


def reference_forward(matrix_1, matrix_2, weight):
    # plain-JAX reference mirroring the PyTorch forward (label_dim == 1)
    inter = jnp.einsum("brd,de->bre", matrix_1, weight)
    return jnp.einsum("bre,bse->brs", inter, matrix_2)


if __name__ == "__main__":
    key = jax.random.PRNGKey(0)
    k_w, k_x, k_y = jax.random.split(key, 3)

    B, R1, R2 = 2, 8, 8
    matrix_1_dim, matrix_2_dim = 32, 32

    weight, bias = init_params(k_w, matrix_1_dim, matrix_2_dim)
    matrix_1 = jax.random.normal(k_x, (B, R1, matrix_1_dim), dtype=jnp.float32)
    matrix_2 = jax.random.normal(k_y, (B, R2, matrix_2_dim), dtype=jnp.float32)

    out = bilinear_matrix_attention(matrix_1, matrix_2, weight)
    out = jax.block_until_ready(out)

    ref = reference_forward(matrix_1, matrix_2, weight)
    assert out.shape == (B, R1, R2)
    assert jnp.allclose(out, ref, atol=1e-5, rtol=1e-5)

    print("KERNEL_OK")
</pallas_src>

<mosaic_0001>
module attributes {stable_mosaic.version = 11 : i64} {
  func.func @_bilinear_kernel(%arg0: i32, %arg1: i32, %arg2: i32, %arg3: memref<1x8x128xf32, #tpu.memory_space<vmem>>, %arg4: memref<128x128xf32, #tpu.memory_space<vmem>>, %arg5: memref<1x128x128xf32, #tpu.memory_space<vmem>>, %arg6: memref<1x8x128xf32, #tpu.memory_space<vmem>>, %arg7: memref<8x128xf32, #tpu.memory_space<vmem>>) attributes {dimension_semantics = [#tpu.dimension_semantics<parallel>, #tpu.dimension_semantics<parallel>, #tpu.dimension_semantics<arbitrary>], iteration_bounds = array<i64: 2, 1, 1>, scalar_prefetch = 0 : i64, scratch_operands = 1 : i64, tpu.core_type = #tpu.core_type<tc>, window_params = [{transform_indices = @transform_0, window_bounds = array<i64: 1, 8, 128>}, {pipeline_mode = #tpu.pipeline_mode<synchronous>, transform_indices = @transform_1, window_bounds = array<i64: 128, 128>}, {transform_indices = @transform_2, window_bounds = array<i64: 1, 128, 128>}, {transform_indices = @transform_3, window_bounds = array<i64: 1, 8, 128>}]} {
    %c0_i32 = arith.constant 0 : i32
    %0 = arith.cmpi eq, %arg2, %c0_i32 : i32
    %1 = arith.extui %0 : i1 to i32
    %c0_i32_0 = arith.constant 0 : i32
    %2 = arith.cmpi ne, %1, %c0_i32_0 : i32
    scf.if %2 {
      %c0_8 = arith.constant 0 : index
      %c0_9 = arith.constant 0 : index
      %c0_10 = arith.constant 0 : index
      %10 = vector.load %arg3[%c0_8, %c0_9, %c0_10] : memref<1x8x128xf32, #tpu.memory_space<vmem>>, vector<1x8x128xf32>
      %11 = vector.shape_cast %10 : vector<1x8x128xf32> to vector<8x128xf32>
      %c0_11 = arith.constant 0 : index
      %c0_12 = arith.constant 0 : index
      %12 = vector.load %arg4[%c0_11, %c0_12] : memref<128x128xf32, #tpu.memory_space<vmem>>, vector<128x128xf32>
      %cst_13 = arith.constant dense<0.000000e+00> : vector<8x128xf32>
      %13 = tpu.matmul %11, %12, %cst_13 {dimension_numbers = #tpu.dot_dimension_numbers<[1], [0], [0], [1], [0, 0, 1, 1], [], []>} : vector<8x128xf32>, vector<128x128xf32>, vector<8x128xf32> -> vector<8x128xf32>
      %c0_14 = arith.constant 0 : index
      %c0_15 = arith.constant 0 : index
      %14 = vector.load %arg7[%c0_14, %c0_15] : memref<8x128xf32, #tpu.memory_space<vmem>>, vector<8x128xf32>
      tpu.vector_store %arg7[%c0_14, %c0_15], %13 {strides = array<i32>} : memref<8x128xf32, #tpu.memory_space<vmem>>, vector<8x128xf32>,
    } else {
    }
    %c0 = arith.constant 0 : index
    %c0_1 = arith.constant 0 : index
    %3 = vector.load %arg7[%c0, %c0_1] : memref<8x128xf32, #tpu.memory_space<vmem>>, vector<8x128xf32>
    %c0_2 = arith.constant 0 : index
    %c0_3 = arith.constant 0 : index
    %c0_4 = arith.constant 0 : index
    %4 = vector.load %arg5[%c0_2, %c0_3, %c0_4] : memref<1x128x128xf32, #tpu.memory_space<vmem>>, vector<1x128x128xf32>
    %5 = vector.shape_cast %4 : vector<1x128x128xf32> to vector<128x128xf32>
    %cst = arith.constant dense<0.000000e+00> : vector<8x128xf32>
    %6 = tpu.matmul %3, %5, %cst {dimension_numbers = #tpu.dot_dimension_numbers<[1], [1], [0], [0], [0, 0, 1, 0], [], []>} : vector<8x128xf32>, vector<128x128xf32>, vector<8x128xf32> -> vector<8x128xf32>
    %c0_5 = arith.constant 0 : index
    %c0_6 = arith.constant 0 : index
    %c0_7 = arith.constant 0 : index
    %7 = vector.load %arg6[%c0_5, %c0_6, %c0_7] : memref<1x8x128xf32, #tpu.memory_space<vmem>>, vector<1x8x128xf32>
    %8 = vector.shape_cast %7 : vector<1x8x128xf32> to vector<8x128xf32>
    %9 = vector.shape_cast %6 : vector<8x128xf32> to vector<1x8x128xf32>
    tpu.vector_store %arg6[%c0_5, %c0_6, %c0_7], %9 {strides = array<i32>} : memref<1x8x128xf32, #tpu.memory_space<vmem>>, vector<1x8x128xf32>,
    return
  }
  func.func @transform_0(%arg0: i32, %arg1: i32, %arg2: i32) -> (i32, i32, i32) {
    %c0_i32 = arith.constant 0 : i32
    %c0_i32_0 = arith.constant 0 : i32
    return %arg0, %arg1, %c0_i32 : i32, i32, i32
  }
  func.func @transform_1(%arg0: i32, %arg1: i32, %arg2: i32) -> (i32, i32) {
    %c0_i32 = arith.constant 0 : i32
    %c0_i32_0 = arith.constant 0 : i32
    %c0_i32_1 = arith.constant 0 : i32
    return %c0_i32, %c0_i32_0 : i32, i32
  }
  func.func @transform_2(%arg0: i32, %arg1: i32, %arg2: i32) -> (i32, i32, i32) {
    %c0_i32 = arith.constant 0 : i32
    %c0_i32_0 = arith.constant 0 : i32
    return %arg0, %arg2, %c0_i32 : i32, i32, i32
  }
  func.func @transform_3(%arg0: i32, %arg1: i32, %arg2: i32) -> (i32, i32, i32) {
    %c0_i32 = arith.constant 0 : i32
    return %arg0, %arg1, %arg2 : i32, i32, i32
  }
}

module attributes {stable_mosaic.version = 11 : i64} {
  func.func @_bilinear_kernel(%arg0: i32, %arg1: i32, %arg2: i32, %arg3: memref<1x8x128xf32, #tpu.memory_space<vmem>>, %arg4: memref<128x128xf32, #tpu.memory_space<vmem>>, %arg5: memref<1x128x128xf32, #tpu.memory_space<vmem>>, %arg6: memref<1x8x128xf32, #tpu.memory_space<vmem>>, %arg7: memref<8x128xf32, #tpu.memory_space<vmem>>) attributes {dimension_semantics = [#tpu.dimension_semantics<parallel>, #tpu.dimension_semantics<parallel>, #tpu.dimension_semantics<arbitrary>], iteration_bounds = array<i64: 2, 1, 1>, scalar_prefetch = 0 : i64, scratch_operands = 1 : i64, tpu.core_type = #tpu.core_type<tc>, window_params = [{transform_indices = @transform_0, window_bounds = array<i64: 1, 8, 128>}, {pipeline_mode = #tpu.pipeline_mode<synchronous>, transform_indices = @transform_1, window_bounds = array<i64: 128, 128>}, {transform_indices = @transform_2, window_bounds = array<i64: 1, 128, 128>}, {transform_indices = @transform_3, window_bounds = array<i64: 1, 8, 128>}]} {
    %c0_i32 = arith.constant 0 : i32
    %0 = arith.cmpi eq, %arg2, %c0_i32 : i32
    %1 = arith.extui %0 : i1 to i32
    %c0_i32_0 = arith.constant 0 : i32
    %2 = arith.cmpi ne, %1, %c0_i32_0 : i32
    scf.if %2 {
      %c0_8 = arith.constant 0 : index
      %c0_9 = arith.constant 0 : index
      %c0_10 = arith.constant 0 : index
      %10 = vector.load %arg3[%c0_8, %c0_9, %c0_10] : memref<1x8x128xf32, #tpu.memory_space<vmem>>, vector<1x8x128xf32>
      %11 = vector.shape_cast %10 : vector<1x8x128xf32> to vector<8x128xf32>
      %c0_11 = arith.constant 0 : index
      %c0_12 = arith.constant 0 : index
      %12 = vector.load %arg4[%c0_11, %c0_12] : memref<128x128xf32, #tpu.memory_space<vmem>>, vector<128x128xf32>
      %cst_13 = arith.constant dense<0.000000e+00> : vector<8x128xf32>
      %13 = tpu.matmul %11, %12, %cst_13 {dimension_numbers = #tpu.dot_dimension_numbers<[1], [0], [0], [1], [0, 0, 1, 1], [], []>} : vector<8x128xf32>, vector<128x128xf32>, vector<8x128xf32> -> vector<8x128xf32>
      %c0_14 = arith.constant 0 : index
      %c0_15 = arith.constant 0 : index
      %14 = vector.load %arg7[%c0_14, %c0_15] : memref<8x128xf32, #tpu.memory_space<vmem>>, vector<8x128xf32>
      tpu.vector_store %arg7[%c0_14, %c0_15], %13 {strides = array<i32>} : memref<8x128xf32, #tpu.memory_space<vmem>>, vector<8x128xf32>,
    } else {
    }
    %c0 = arith.constant 0 : index
    %c0_1 = arith.constant 0 : index
    %3 = vector.load %arg7[%c0, %c0_1] : memref<8x128xf32, #tpu.memory_space<vmem>>, vector<8x128xf32>
    %c0_2 = arith.constant 0 : index
    %c0_3 = arith.constant 0 : index
    %c0_4 = arith.constant 0 : index
    %4 = vector.load %arg5[%c0_2, %c0_3, %c0_4] : memref<1x128x128xf32, #tpu.memory_space<vmem>>, vector<1x128x128xf32>
    %5 = vector.shape_cast %4 : vector<1x128x128xf32> to vector<128x128xf32>
    %cst = arith.constant dense<0.000000e+00> : vector<8x128xf32>
    %6 = tpu.matmul %3, %5, %cst {dimension_numbers = #tpu.dot_dimension_numbers<[1], [1], [0], [0], [0, 0, 1, 0], [], []>} : vector<8x128xf32>, vector<128x128xf32>, vector<8x128xf32> -> vector<8x128xf32>
    %c0_5 = arith.constant 0 : index
    %c0_6 = arith.constant 0 : index
    %c0_7 = arith.constant 0 : index
    %7 = vector.load %arg6[%c0_5, %c0_6, %c0_7] : memref<1x8x128xf32, #tpu.memory_space<vmem>>, vector<1x8x128xf32>
    %8 = vector.shape_cast %7 : vector<1x8x128xf32> to vector<8x128xf32>
    %9 = vector.shape_cast %6 : vector<8x128xf32> to vector<1x8x128xf32>
    tpu.vector_store %arg6[%c0_5, %c0_6, %c0_7], %9 {strides = array<i32>} : memref<1x8x128xf32, #tpu.memory_space<vmem>>, vector<1x8x128xf32>,
    return
  }
  func.func @transform_0(%arg0: i32, %arg1: i32, %arg2: i32) -> (i32, i32, i32) {
    %c0_i32 = arith.constant 0 : i32
    %c0_i32_0 = arith.constant 0 : i32
    return %arg0, %arg1, %c0_i32 : i32, i32, i32
  }
  func.func @transform_1(%arg0: i32, %arg1: i32, %arg2: i32) -> (i32, i32) {
    %c0_i32 = arith.constant 0 : i32
    %c0_i32_0 = arith.constant 0 : i32
    %c0_i32_1 = arith.constant 0 : i32
    return %c0_i32, %c0_i32_0 : i32, i32
  }
  func.func @transform_2(%arg0: i32, %arg1: i32, %arg2: i32) -> (i32, i32, i32) {
    %c0_i32 = arith.constant 0 : i32
    %c0_i32_0 = arith.constant 0 : i32
    return %arg0, %arg2, %c0_i32 : i32, i32, i32
  }
  func.func @transform_3(%arg0: i32, %arg1: i32, %arg2: i32) -> (i32, i32, i32) {
    %c0_i32 = arith.constant 0 : i32
    return %arg0, %arg1, %arg2 : i32, i32, i32
  }
}

</mosaic_0001>

<bundles_post_ra>
// kernel: tpu_custom_call.1
= control target key start
LH: loop header
LB: loop body
LE: loop exit
PB: predicated region body
PF: predicated region fallthrough
CT: control target
= control target key end

     0   :  { %8 = vsyncpa [#allocation4], 0  ;;  %s1345_s0 = inlined_call_operand.hbm [shape: f32[2,8,128], index: 0, kind: input, shape index: {}]   ;;  %s1346_s1 = inlined_call_operand.hbm [shape: f32[128,128], index: 1, kind: input, shape index: {}]   ;;  %s1347_s2 = inlined_call_operand.hbm [shape: f32[2,128,128], index: 2, kind: input, shape index: {}]   ;;  %s1348_s3 = inlined_call_operand.hbm [shape: f32[2,8,128], index: 3, kind: output, shape index: {}]  }
   0x1   :  { %10 = vsyncpa [#allocation4 + $0x1], 0 }
   0x2   :  { %11 = vsyncpa [#allocation7], 0 }
   0x3   :  { %12 = vsyncpa [#allocation5], 0 }
   0x4   :  { %14 = vsyncpa [#allocation5 + $0x1], 0  ;;  %s1046_s12 = smov 0   ;;  %s1048_s13 = smov 0  }
   0x5   :  { %s1050_s14 = smov 0   ;;  %s1052_s15 = smov 0  }
   0x6   :  { %s1054_s16 = smov 0   ;;  %s1056_s17 = smov 0  }
   0x7 LB: > { %s39_s18 = sadd.s32 1, %s1011_s16  ;;  %s48_s19 = sadd.s32 1, %s1003_s14  ;;  %s1015_s17 = sphi %s1056_s17, %s20_s17   ;;  %s1011_s16 = sphi %s1054_s16, %s1372_s16   ;;  %s1007_s15 = sphi %s1052_s15, %s1371_s15   ;;  %s1003_s14 = sphi %s1050_s14, %s1370_s14   ;;  %s999_s13 = sphi %s1048_s13, %s1369_s13   ;;  %s995_s12 = sphi %s1046_s12, %s1368_s12  }
   0x8   : > { %p41_p0 = scmp.ge.s32.totalorder %s39_s18, 2  ;;  %p55_p1 = scmp.ne.s32.totalorder %s1003_s14, %s999_s13 }
   0x9   : > { %p56_p2 = scmp.eq.s32.totalorder %s1015_s17, 0  ;;  %p780_p5 = scmp.lt.s32.totalorder %s1015_s17, 2 }
   0xa   : > { %s1374_s18 = smov (%p41_p0, %s39_s18), 0  ;;  %s177_s21 = sand.u32 1, %s1015_s17  }
   0xb   : > { %p57_p4 = por %p56_p2, %p55_p1  ;;  %s43_s20 = ssub.s32 %s1011_s16, %s1374_s18 }
   0xc   : > { %p46_p6 = scmp.eq.s32.totalorder %s43_s20, 0  ;;  %s179_s22 = sand.u32 1, %s1003_s14  }
   0xd   : > { %s588_s23 = sshll.u32 %s1011_s16, 7  ;;  %s587_s25 = sshll.u32 %s179_s22, 3 }
   0xe   : > { %s1094_s24 = scalar_select %p46_p6, %s1003_s14, %s48_s19  }
   0xf   : > { %s1099_s28 = scalar_lea.hbm %s1345_s0, %s588_s23  ;;  %p1101_p7 = pnand %p780_p5, %p57_p4 }
  0x10   : > { %s181_s30 = scalar_lea.vmem [#allocation3], %s587_s25  ;;  %s1105_s5 = sshll.u32 %s179_s22, 7 }
  0x11   : > { %s189_s4 = sshll.u32 %s181_s30, 4  ;;  %s1109_s6 = scalar_lea.sflag [#allocation4], %s177_s21  ;;  %s1107_s4 = int_to_ptr.vmem [resolvable:$true] %s189_s4 }
  0x12   : > { %s837_s7 = scalar_lea.hbm %s1099_s28, 128  ;;  %p839_p9 = pneg %p1101_p7 }
  0x13   : > { %p838_p8 = scmp.ne.s32.totalorder %s1099_s28, %s837_s7  ;;  %s842_s10 = scalar_lea.hbm %s1345_s0, 256 }
  0x14   : > { %p843_p12 = scmp.lt.u32.totalorder %s1099_s28, %s1345_s0  ;;  %p844_p13 = scmp.lt.u32.totalorder %s842_s10, %s837_s7 }
  0x15   : > { %p840_p10 = pnand %p839_p9, %p838_p8  ;;  %p846_p2 = scmp.lt.u32.totalorder %s837_s7, %s1099_s28 }
  0x16   : > { %p845_p0 = por %p844_p13, %p843_p12 }
  0x17   : > { %p841_p11 = pneg %p840_p10 }
  0x18   : > { %p847_p4 = por %p846_p2, %p845_p0 }
  0x1a   : > { %p848_p5 = pnand %p847_p4, %p841_p11 }
  0x1c   : > { %851 = shalt.err (!%p848_p5)
}
  0x1d   : > { %s852_s20 = scalar_lea.vmem %s1107_s4, 128  ;;  %s1017_s21 = smov [#allocation3]  }
  0x1e   : > { %p853_p6 = scmp.ne.s32.totalorder %s1107_s4, %s852_s20  ;;  %s857_s22 = sshll.u32 %s1017_s21, 4  ;;  %s858_s22 = int_to_ptr.vmem [resolvable:$false] %s857_s22 }
  0x1f   : > { %s859_s23 = scalar_lea.vmem %s858_s22, 256  ;;  %p860_p3 = scmp.lt.s32.totalorder %s1107_s4, %s858_s22 }
  0x20   : > { %p855_p8 = pnand %p853_p6, %p839_p9  ;;  %p861_p12 = scmp.lt.s32.totalorder %s859_s23, %s852_s20 }
  0x22   : > { %p856_p10 = pneg %p855_p8  ;;  %p862_p13 = por %p861_p12, %p860_p3 }
  0x24   : > { %p863_p0 = pnand %p862_p13, %p856_p10 }
  0x26   : > { %866 = shalt.err (!%p863_p0)
}
  0x27   : > { %771 = dma.hbm_to_vmem [thread:$0]  (!%p1101_p7), %s1099_s28, 128, %s1107_s4, %s1109_s6  }
  0x28   : > { %s601_s25 = sshll.u32 %s1011_s16, 11  ;;  %s200_s26 = scalar_lea.vmem [#allocation8], %s1105_s5 }
  0x29   : > { %s209_s27 = sshll.u32 %s200_s26, 4  ;;  %s1140_s30 = sadd.s32 4294967295, %s1015_s17   ;;  %s1166_s27 = int_to_ptr.vmem [resolvable:$true] %s209_s27 }
  0x2a   : > { %s583_s7 = sadd.s32 4294967294, %s1015_s17   ;;  %p61_p3 = scmp.ne.s32.totalorder %s999_s13, %s995_s12 }
  0x2b   : > { %p1349_p11 = scmp.eq.s32.totalorder %s1140_s30, 0  ;;  %p138_p2 = scmp.eq.s32.totalorder %s1140_s30, 1 }
  0x2c   : > { %p144_p4 = scmp.eq.s32.totalorder %s583_s7, 1  ;;  %p584_p6 = scmp.ge.s32.totalorder %s1015_s17, 1 }
  0x2d   : > { %p1149_p5 = por %p1349_p11, %p61_p3  ;;  %p1157_p8 = por %p138_p2, %p55_p1 }
  0x2e   : > { %p1161_p10 = por %p144_p4, %p61_p3  ;;  %p151_p12 = scmp.lt.s32.totalorder %s1015_s17, 3 }
  0x2f   : > { %s1354_s8 = scalar_select %p1149_p5, 1, 0 }
  0x30   : > { %s1355_s28 = scalar_select %p1157_p8, 1, 0 }
  0x31   : > { %s1356_s4 = scalar_select %p1161_p10, 1, 0 }
  0x32   : > { %p1168_p13 = pnand %p584_p6, %p151_p12  ;;  %s1018_s9 = smov [#allocation6]  }
  0x33   : > { %s1172_s10 = sshll.u32 %s1018_s9, 4  ;;  %s1179_s20 = scalar_lea.hbm %s1347_s2, %s601_s25  ;;  %s164_s10 = int_to_ptr.vmem [resolvable:$true] %s1172_s10 }
  0x34   : > { %s1357_s5 = scalar_select %p1168_p13, 1, 0 }
  0x35   : > { %s867_s21 = scalar_lea.hbm %s1179_s20, 2048  ;;  %s872_s26 = scalar_lea.hbm %s1347_s2, 4096 }
  0x36   : > { %p868_p0 = scmp.ne.s32.totalorder %s1179_s20, %s867_s21  ;;  %p873_p4 = scmp.lt.u32.totalorder %s1179_s20, %s1347_s2 }
  0x37   : > { %p874_p6 = scmp.lt.u32.totalorder %s872_s26, %s867_s21  ;;  %p876_p1 = scmp.lt.u32.totalorder %s867_s21, %s1179_s20 }
  0x38   : > { %p870_p3 = pnand %p868_p0, %p839_p9 }
  0x39   : > { %p875_p12 = por %p874_p6, %p873_p4 }
  0x3a   : > { %p871_p2 = pneg %p870_p3 }
  0x3b   : > { %p877_p11 = por %p876_p1, %p875_p12 }
  0x3d   : > { %p878_p10 = pnand %p877_p11, %p871_p2 }
  0x3f   : > { %881 = shalt.err (!%p878_p10)
}
  0x40   : > { %s882_s25 = scalar_lea.vmem %s1166_s27, 2048  ;;  %s1019_s11 = smov [#allocation8]  }
  0x41   : > { %p883_p0 = scmp.ne.s32.totalorder %s1166_s27, %s882_s25  ;;  %s887_s19 = sshll.u32 %s1019_s11, 4  ;;  %s888_s19 = int_to_ptr.vmem [resolvable:$false] %s887_s19 }
  0x42   : > { %s889_s22 = scalar_lea.vmem %s888_s19, 4096  ;;  %p890_p5 = scmp.lt.s32.totalorder %s1166_s27, %s888_s19 }
  0x43   : > { %p885_p3 = pnand %p883_p0, %p839_p9  ;;  %p891_p4 = scmp.lt.s32.totalorder %s889_s22, %s882_s25 }
  0x45   : > { %p886_p8 = pneg %p885_p3  ;;  %p892_p6 = por %p891_p4, %p890_p5 }
  0x47   : > { %p893_p1 = pnand %p892_p6, %p886_p8 }
  0x49   : > { %896 = shalt.err (!%p893_p1)
}
  0x4a   : > { %s1020_s21 = smov 128   ;;  %s1021_s23 = smov 8  }
  0x4b   : > { %774 = dma.hbm_to_vmem [thread:$0]  (!%p1101_p7), %s1179_s20, 2048, %s1166_s27, %s1109_s6, %s1020_s21, %s1020_s21, %s1021_s23  }
  0x4c   : > { %p1358_p9 = scmp.eq.s32.totalorder %s1140_s30, 0  ;;  %p1359_p11 = pneg %p1168_p13 }
  0x4d   : > { %s897_s25 = scalar_lea.hbm %s1346_s1, 2048 }
  0x4e   : > { %p1211_p10 = pnand %p1359_p11, %p1358_p9  ;;  %p898_p5 = scmp.ne.s32.totalorder %s1346_s1, %s897_s25 }
  0x4f   : > { %p904_p12 = scmp.lt.u32.totalorder %s897_s25, %s1346_s1 }
  0x50   : > { %p899_p8 = pneg %p1211_p10 }
  0x52   : > { %p900_p7 = pnand %p899_p8, %p898_p5 }
  0x54   : > { %p901_p2 = pneg %p900_p7 }
  0x56   : > { %p906_p0 = pnand %p904_p12, %p901_p2 }
  0x58   : > { %909 = shalt.err (!%p906_p0)
}
  0x59   : > { %s910_s27 = scalar_lea.vmem %s164_s10, 2048  ;;  %p918_p1 = scmp.lt.s32.totalorder %s164_s10, %s164_s10 }
  0x5a   : > { %p911_p3 = scmp.ne.s32.totalorder %s164_s10, %s910_s27  ;;  %p919_p9 = scmp.lt.s32.totalorder %s910_s27, %s910_s27 }
  0x5c   : > { %p913_p4 = pnand %p911_p3, %p899_p8  ;;  %p920_p11 = por %p919_p9, %p918_p1 }
  0x5e   : > { %p914_p6 = pneg %p913_p4 }
  0x60   : > { %p921_p13 = pnand %p920_p11, %p914_p6 }
  0x62   : > { %924 = shalt.err (!%p921_p13)
}
  0x63   : > { %767 = dma.hbm_to_vmem [thread:$0]  (!%p1211_p10), %s1346_s1, 2048, %s164_s10, [#allocation7], %s1020_s21, %s1020_s21, %s1021_s23  }
  0x64   : > { %p1361_p5 = scmp.ne.s32.totalorder %s1357_s5, 0 }
  0x65   : > { %s223_s7 = sand.u32 (!%p1361_p5), 1, %s1140_s30   ;;  %s1235_s9 = sand.u32 (!%p1361_p5), 1, %s999_s13  }
  0x66   : > { %221 = sbr.rel (%p1361_p5) target bundleno = 588 (0x24c), region = 32  ;;  %s593_s25 = sshll.u32 (!%p1361_p5), %s1235_s9, 3 }
  0x67   : > { %s224_s11 = scalar_lea.sflag (!%p1361_p5), [#allocation4], %s223_s7  ;;  %s1240_s19 = scalar_lea.vmem (!%p1361_p5), [#allocation3], %s593_s25 }
  0x68   : > { %p1362_p13 = scmp.ne.s32.totalorder (!%p1361_p5), %s1354_s8, 0 }
  0x6d   : > { %978 = dma.done.wait (%p1362_p13), %s224_s11, 128  }
  0x6e   : > { %980 = vsyncadd (%p1362_p13), %s224_s11, 4294967168  ;;  %p1363_p10 = scmp.eq.s32.totalorder %s1140_s30, 0 }
  0x70   : > { %982 = dma.done.wait (%p1363_p10), [#allocation7], 2048   ;;  %p1364_p8 = pmov %p1363_p10 }
  0x71   : > { %s595_s5 = sshll.u32 %s1235_s9, 7 }
  0x72   : > { %984 = vsyncadd (%p1364_p8), [#allocation7], 4294965248  ;;  %s1251_s10 = scalar_lea.vmem [#allocation8], %s595_s5 }
  0x73   : > { %986 = dma.done.wait (%p1362_p13), %s224_s11, 2048  }
  0x74   : > { %988 = vsyncadd (%p1362_p13), %s224_s11, 4294965248  ;;  %v1022_v0 = vmov 0.0|0.0   ;;  %vm1023_vm0 = vmmov 0   ;;  %v1024_v1 = vmov 0.0   ;;  %v274_v2 = vld [vmem:[#allocation6] sm:$0xff]  ;;  %v275_v3 = vld [vmem:[#allocation6 + $0x8] sm:$0xff] }
  0x75   : > { %706 = vmatprep.subr.bf16.mxu0 %v1022_v0  ;;  %668 = vmatprep.mubr.msk.f32.mxu0 %vm1023_vm0, %v1024_v1  ;;  %v276_v4 = vld [vmem:[#allocation6 + $0x10] sm:$0xff]  ;;  %v707_v5 = vpack.c.bf16 %v275_v3, %v274_v2  ;;  %v277_v6 = vld [vmem:[#allocation6 + $0x18] sm:$0xff]  ;;  %v278_v8 = vld [vmem:[#allocation6 + $0x20] sm:$0xff]  ;;  %s267_s30 = scalar_lea.vmem [#allocation9], %s593_s25  ;;  %s598_s21 = sshll.u32 %s1007_s15, 7 }
  0x76   : > { %730 = vmatprep.subr.bf16.mxu1 %v1022_v0  ;;  %703 = vmatprep.mubr.msk.f32.mxu1 %vm1023_vm0, %v1024_v1  ;;  %v710_v7 = vpack.c.bf16 %v277_v6, %v276_v4  ;;  %v279_v9 = vld [vmem:[#allocation6 + $0x28] sm:$0xff]  ;;  %v362_v10 = vld [vmem:[%s1251_s10] sm:$0xff]  ;;  %v280_v14 = vld [vmem:[#allocation6 + $0x30] sm:$0xff]  ;;  %s465_s8 = sshll.u32 %s267_s30, 4  ;;  %s1298_s29 = scalar_lea.hbm %s1348_s3, %s598_s21  ;;  %s1293_s8 = int_to_ptr.vmem [resolvable:$true] %s465_s8 }
  0x77   : > { %708 = vmatpush3.bf16.msra.mxu0 %v707_v5  ;;  %v363_v11 = vld [vmem:[%s1251_s10 + $0x8] sm:$0xff]  ;;  %v713_v12 = vpack.c.bf16 %v279_v9, %v278_v8  ;;  %v281_v15 = vld [vmem:[#allocation6 + $0x38] sm:$0xff]  ;;  %v364_v16 = vld [vmem:[%s1251_s10 + $0x10] sm:$0xff]  ;;  %s450_s6 = scalar_lea.sflag [#allocation5], %s1235_s9  ;;  %s925_s27 = scalar_lea.vmem %s1293_s8, 128 }
  0x78   : > { %709 = vmatprep.subr.bf16.mxu0 %v1022_v0  ;;  %v731_v13 = vpack.c.bf16 %v363_v11, %v362_v10  ;;  %v365_v17 = vld [vmem:[%s1251_s10 + $0x18] sm:$0xff]  ;;  %v716_v18 = vpack.c.bf16 %v281_v15, %v280_v14  ;;  %v282_v19 = vld [vmem:[#allocation6 + $0x40] sm:$0xff]  ;;  %v283_v20 = vld [vmem:[#allocation6 + $0x48] sm:$0xff]  ;;  %p926_p7 = scmp.ne.s32.totalorder %s1293_s8, %s925_s27  ;;  %p1365_p2 = scmp.ne.s32.totalorder %s1355_s28, 0 }
  0x79   : > { %v734_v21 = vpack.c.bf16 %v365_v17, %v364_v16  ;;  %v719_v22 = vpack.c.bf16 %v283_v20, %v282_v19  ;;  %v284_v23 = vld [vmem:[#allocation6 + $0x50] sm:$0xff]  ;;  %v285_v24 = vld [vmem:[#allocation6 + $0x58] sm:$0xff]  ;;  %v366_v25 = vld [vmem:[%s1251_s10 + $0x20] sm:$0xff]  ;;  %s1025_s15 = smov [#allocation9]  }
  0x7a   : > { %732 = vmatpush3.bf16.xpose.msra.mxu1 %v731_v13  ;;  %v367_v26 = vld [vmem:[%s1251_s10 + $0x28] sm:$0xff]  ;;  %v722_v27 = vpack.c.bf16 %v285_v24, %v284_v23  ;;  %v286_v28 = vld [vmem:[#allocation6 + $0x60] sm:$0xff]  ;;  %v288_v32 = vld [vmem:[#allocation6 + $0x70] sm:$0xff]  ;;  %p927_p12 = pnand %p926_p7, %p1365_p2  ;;  %s929_s20 = sshll.u32 %s1025_s15, 4  ;;  %s930_s20 = int_to_ptr.vmem [resolvable:$false] %s929_s20 }
  0x7b   : > { %711 = vmatpush3.bf16.msra.mxu0 %v710_v7  ;;  %733 = vmatprep.subr.bf16.mxu1 %v1022_v0  ;;  %v287_v29 = vld [vmem:[#allocation6 + $0x68] sm:$0xff]  ;;  %v737_v30 = vpack.c.bf16 %v367_v26, %v366_v25  ;;  %v289_v33 = vld [vmem:[#allocation6 + $0x78] sm:$0xff]  ;;  %v368_v34 = vld [vmem:[%s1251_s10 + $0x30] sm:$0xff]  ;;  %s931_s22 = scalar_lea.vmem %s930_s20, 256  ;;  %p932_p3 = scmp.lt.s32.totalorder %s1293_s8, %s930_s20 }
  0x7c   : > { %712 = vmatprep.subr.bf16.mxu0 %v1022_v0  ;;  %v725_v31 = vpack.c.bf16 %v287_v29, %v286_v28  ;;  %v369_v35 = vld [vmem:[%s1251_s10 + $0x38] sm:$0xff]  ;;  %v728_v36 = vpack.c.bf16 %v289_v33, %v288_v32  ;;  %v370_v39 = vld [vmem:[%s1251_s10 + $0x40] sm:$0xff]  ;;  %v371_v40 = vld [vmem:[%s1251_s10 + $0x48] sm:$0xff]  ;;  %p928_p0 = pneg %p927_p12  ;;  %p933_p4 = scmp.lt.s32.totalorder %s931_s22, %s925_s27 }
  0x7d   : > { %v740_v37 = vpack.c.bf16 %v369_v35, %v368_v34  ;;  %v273_v38 = vld [vmem:[%s1240_s19] sm:$0xff]  ;;  %v743_v41 = vpack.c.bf16 %v371_v40, %v370_v39  ;;  %v374_v45 = vld [vmem:[%s1251_s10 + $0x60] sm:$0xff]  ;;  %v375_v46 = vld [vmem:[%s1251_s10 + $0x68] sm:$0xff] }
  0x7e   : > { %v372_v42 = vld [vmem:[%s1251_s10 + $0x50] sm:$0xff]  ;;  %v373_v43 = vld [vmem:[%s1251_s10 + $0x58] sm:$0xff]  ;;  %v749_v47 = vpack.c.bf16 %v375_v46, %v374_v45  ;;  %p934_p6 = por %p933_p4, %p932_p3 }
  0x7f   : > { %714 = vmatpush3.bf16.msra.mxu0 %v713_v12  ;;  %v746_v44 = vpack.c.bf16 %v373_v43, %v372_v42  ;;  %v376_v48 = vld [vmem:[%s1251_s10 + $0x70] sm:$0xff]  ;;  %v377_v49 = vld [vmem:[%s1251_s10 + $0x78] sm:$0xff] }
  0x80   : > { %715 = vmatprep.subr.bf16.mxu0 %v1022_v0  ;;  %v752_v50 = vpack.c.bf16 %v377_v49, %v376_v48  ;;  %p935_p1 = pnand %p934_p6, %p928_p0 }
  0x82   : > { %735 = vmatpush3.bf16.xpose.msra.mxu1 %v734_v21 }
  0x83   : > { %717 = vmatpush3.bf16.msra.mxu0 %v716_v18  ;;  %736 = vmatprep.subr.bf16.mxu1 %v1022_v0 }
  0x84   : > { %718 = vmatprep.subr.bf16.mxu0 %v1022_v0 }
  0x87   : > { %720 = vmatpush3.bf16.msra.mxu0 %v719_v22 }
  0x88   : > { %721 = vmatprep.subr.bf16.mxu0 %v1022_v0 }
  0x8a   : > { %738 = vmatpush3.bf16.xpose.msra.mxu1 %v737_v30 }
  0x8b   : > { %723 = vmatpush3.bf16.msra.mxu0 %v722_v27  ;;  %739 = vmatprep.subr.bf16.mxu1 %v1022_v0 }
  0x8c   : > { %724 = vmatprep.subr.bf16.mxu0 %v1022_v0 }
  0x8f   : > { %726 = vmatpush3.bf16.msra.mxu0 %v725_v31 }
  0x90   : > { %727 = vmatprep.subr.bf16.mxu0 %v1022_v0 }
  0x92   : > { %741 = vmatpush3.bf16.xpose.msra.mxu1 %v740_v37 }
  0x93   : > { %729 = vmatpush3.bf16.msra.mxu0 %v728_v36  ;;  %742 = vmatprep.subr.bf16.mxu1 %v1022_v0 }
  0x96   : > { %669 = vmatmul.mubr.f32.vlgmr.msra.gmra.mrb[0].mxu0 %v273_v38 }
  0x9a   : > { %744 = vmatpush3.bf16.xpose.msra.mxu1 %v743_v41 }
  0x9b   : > { %745 = vmatprep.subr.bf16.mxu1 %v1022_v0 }
  0xa2   : > { %747 = vmatpush3.bf16.xpose.msra.mxu1 %v746_v44 }
  0xa3   : > { %748 = vmatprep.subr.bf16.mxu1 %v1022_v0 }
  0xaa   : > { %750 = vmatpush3.bf16.xpose.msra.mxu1 %v749_v47 }
  0xab   : > { %751 = vmatprep.subr.bf16.mxu1 %v1022_v0 }
  0xb2   : > { %753 = vmatpush3.bf16.xpose.msra.mxu1 %v752_v50 }
 0x169   : > { %v356_v51 = vpop.f32.mrb[0].mxu0 }
 0x16a   : > { %v670_v52 = vpop.f32.mrb[1].mxu0  ;;  %704 = vmatmul.mubr.f32.vlgmr.msra.gmra.mrb[0].mxu1 %v356_v51 }
 0x23d   : > { %v444_v53 = vpop.f32.mrb[0].mxu1 }
 0x23e   : > { %448 = vst [vmem:[%s267_s30] sm:$0xff] %v444_v53  ;;  %v705_v54 = vpop.f32.mrb[1].mxu1 }
 0x23f   : > { %938 = shalt.err (!%p935_p1)
}
 0x240   : > { %s939_s7 = scalar_lea.hbm %s1298_s29, 128  ;;  %s943_s11 = scalar_lea.hbm %s1348_s3, 256 }
 0x241   : > { %p940_p9 = scmp.ne.s32.totalorder %s1298_s29, %s939_s7  ;;  %p944_p13 = scmp.lt.u32.totalorder %s1298_s29, %s1348_s3 }
 0x242   : > { %p945_p10 = scmp.lt.u32.totalorder %s943_s11, %s939_s7  ;;  %p947_p7 = scmp.lt.u32.totalorder %s939_s7, %s1298_s29 }
 0x243   : > { %p941_p11 = pnand %p940_p9, %p1365_p2 }
 0x244   : > { %p946_p8 = por %p945_p10, %p944_p13 }
 0x245   : > { %p942_p5 = pneg %p941_p11 }
 0x246   : > { %p948_p12 = por %p947_p7, %p946_p8 }
 0x248   : > { %p949_p0 = pnand %p948_p12, %p942_p5 }
 0x24a   : > { %952 = shalt.err (!%p949_p0)
}
 0x24b   : > { %762 = dma.vmem_to_hbm [thread:$0]  (%p1365_p2), %s1293_s8, 128, %s1298_s29, %s450_s6  }
 0x24c PF: > { %s477_s10 = sand.u32 1, %s995_s12   ;;  %p1366_p3 = scmp.ne.s32.totalorder %s1356_s4, 0 }
 0x24d   : > { %p1367_p4 = scmp.ge.s32.totalorder %s1015_s17, 2  ;;  %s478_s30 = scalar_lea.sflag [#allocation5], %s477_s10 }
 0x24f   : > { %p776_p6 = pnand %p1367_p4, %p1366_p3 }
 0x251   : > { %990 = dma.done.wait (!%p776_p6), %s478_s30, 128  }
 0x252   : > { %992 = vsyncadd (!%p776_p6), %s478_s30, 4294967168  ;;  %s20_s17 = sadd.s32 1, %s1015_s17   ;;  %s1368_s12 = smov %s999_s13 }
 0x253   : > { %p17_p1 = scmp.ge.s32.totalorder %s20_s17, 4   ;;  %s1369_s13 = smov %s1003_s14 }
 0x254   : > { %s1370_s14 = smov %s1094_s24  ;;  %s1371_s15 = smov %s1011_s16 }
 0x255   : > { %s1372_s16 = smov %s1374_s18  ;;  %19 = sbr.rel (!%p17_p1) target bundleno = 7 (0x7), region = 96 }
 0x25c   :  { %483 = vsyncpa [#allocation4], 1 }
 0x25d   :  { %485 = vsyncpa [#allocation4 + $0x1], 1 }
 0x25e   :  { %486 = vsyncpa [#allocation7], 1 }
 0x25f   :  { %487 = vsyncpa [#allocation5], 1 }
 0x260   :  { %489 = vsyncpa [#allocation5 + $0x1], 1 }

// kernel: tpu_custom_call.1
= control target key start
LH: loop header
LB: loop body
LE: loop exit
PB: predicated region body
PF: predicated region fallthrough
CT: control target
= control target key end

     0   :  { %8 = vsyncpa [#allocation4], 0  ;;  %s1345_s0 = inlined_call_operand.hbm [shape: f32[2,8,128], index: 0, kind: input, shape index: {}]   ;;  %s1346_s1 = inlined_call_operand.hbm [shape: f32[128,128], index: 1, kind: input, shape index: {}]   ;;  %s1347_s2 = inlined_call_operand.hbm [shape: f32[2,128,128], index: 2, kind: input, shape index: {}]   ;;  %s1348_s3 = inlined_call_operand.hbm [shape: f32[2,8,128], index: 3, kind: output, shape index: {}]  }
   0x1   :  { %10 = vsyncpa [#allocation4 + $0x1], 0 }
   0x2   :  { %11 = vsyncpa [#allocation7], 0 }
   0x3   :  { %12 = vsyncpa [#allocation5], 0 }
   0x4   :  { %14 = vsyncpa [#allocation5 + $0x1], 0  ;;  %s1046_s12 = smov 0   ;;  %s1048_s13 = smov 0  }
   0x5   :  { %s1050_s14 = smov 0   ;;  %s1052_s15 = smov 0  }
   0x6   :  { %s1054_s16 = smov 0   ;;  %s1056_s17 = smov 0  }
   0x7 LB: > { %s39_s18 = sadd.s32 1, %s1011_s16  ;;  %s48_s19 = sadd.s32 1, %s1003_s14  ;;  %s1015_s17 = sphi %s1056_s17, %s20_s17   ;;  %s1011_s16 = sphi %s1054_s16, %s1372_s16   ;;  %s1007_s15 = sphi %s1052_s15, %s1371_s15   ;;  %s1003_s14 = sphi %s1050_s14, %s1370_s14   ;;  %s999_s13 = sphi %s1048_s13, %s1369_s13   ;;  %s995_s12 = sphi %s1046_s12, %s1368_s12  }
   0x8   : > { %p41_p0 = scmp.ge.s32.totalorder %s39_s18, 2  ;;  %p55_p1 = scmp.ne.s32.totalorder %s1003_s14, %s999_s13 }
   0x9   : > { %p56_p2 = scmp.eq.s32.totalorder %s1015_s17, 0  ;;  %p780_p5 = scmp.lt.s32.totalorder %s1015_s17, 2 }
   0xa   : > { %s1374_s18 = smov (%p41_p0, %s39_s18), 0  ;;  %s177_s21 = sand.u32 1, %s1015_s17  }
   0xb   : > { %p57_p4 = por %p56_p2, %p55_p1  ;;  %s43_s20 = ssub.s32 %s1011_s16, %s1374_s18 }
   0xc   : > { %p46_p6 = scmp.eq.s32.totalorder %s43_s20, 0  ;;  %s179_s22 = sand.u32 1, %s1003_s14  }
   0xd   : > { %s588_s23 = sshll.u32 %s1011_s16, 7  ;;  %s587_s25 = sshll.u32 %s179_s22, 3 }
   0xe   : > { %s1094_s24 = scalar_select %p46_p6, %s1003_s14, %s48_s19  }
   0xf   : > { %s1099_s28 = scalar_lea.hbm %s1345_s0, %s588_s23  ;;  %p1101_p7 = pnand %p780_p5, %p57_p4 }
  0x10   : > { %s181_s30 = scalar_lea.vmem [#allocation3], %s587_s25  ;;  %s1105_s5 = sshll.u32 %s179_s22, 7 }
  0x11   : > { %s189_s4 = sshll.u32 %s181_s30, 4  ;;  %s1109_s6 = scalar_lea.sflag [#allocation4], %s177_s21  ;;  %s1107_s4 = int_to_ptr.vmem [resolvable:$true] %s189_s4 }
  0x12   : > { %s837_s7 = scalar_lea.hbm %s1099_s28, 128  ;;  %p839_p9 = pneg %p1101_p7 }
  0x13   : > { %p838_p8 = scmp.ne.s32.totalorder %s1099_s28, %s837_s7  ;;  %s842_s10 = scalar_lea.hbm %s1345_s0, 256 }
  0x14   : > { %p843_p12 = scmp.lt.u32.totalorder %s1099_s28, %s1345_s0  ;;  %p844_p13 = scmp.lt.u32.totalorder %s842_s10, %s837_s7 }
  0x15   : > { %p840_p10 = pnand %p839_p9, %p838_p8  ;;  %p846_p2 = scmp.lt.u32.totalorder %s837_s7, %s1099_s28 }
  0x16   : > { %p845_p0 = por %p844_p13, %p843_p12 }
  0x17   : > { %p841_p11 = pneg %p840_p10 }
  0x18   : > { %p847_p4 = por %p846_p2, %p845_p0 }
  0x1a   : > { %p848_p5 = pnand %p847_p4, %p841_p11 }
  0x1c   : > { %851 = shalt.err (!%p848_p5)
}
  0x1d   : > { %s852_s20 = scalar_lea.vmem %s1107_s4, 128  ;;  %s1017_s21 = smov [#allocation3]  }
  0x1e   : > { %p853_p6 = scmp.ne.s32.totalorder %s1107_s4, %s852_s20  ;;  %s857_s22 = sshll.u32 %s1017_s21, 4  ;;  %s858_s22 = int_to_ptr.vmem [resolvable:$false] %s857_s22 }
  0x1f   : > { %s859_s23 = scalar_lea.vmem %s858_s22, 256  ;;  %p860_p3 = scmp.lt.s32.totalorder %s1107_s4, %s858_s22 }
  0x20   : > { %p855_p8 = pnand %p853_p6, %p839_p9  ;;  %p861_p12 = scmp.lt.s32.totalorder %s859_s23, %s852_s20 }
  0x22   : > { %p856_p10 = pneg %p855_p8  ;;  %p862_p13 = por %p861_p12, %p860_p3 }
  0x24   : > { %p863_p0 = pnand %p862_p13, %p856_p10 }
  0x26   : > { %866 = shalt.err (!%p863_p0)
}
  0x27   : > { %771 = dma.hbm_to_vmem [thread:$0]  (!%p1101_p7), %s1099_s28, 128, %s1107_s4, %s1109_s6  }
  0x28   : > { %s601_s25 = sshll.u32 %s1011_s16, 11  ;;  %s200_s26 = scalar_lea.vmem [#allocation8], %s1105_s5 }
  0x29   : > { %s209_s27 = sshll.u32 %s200_s26, 4  ;;  %s1140_s30 = sadd.s32 4294967295, %s1015_s17   ;;  %s1166_s27 = int_to_ptr.vmem [resolvable:$true] %s209_s27 }
  0x2a   : > { %s583_s7 = sadd.s32 4294967294, %s1015_s17   ;;  %p61_p3 = scmp.ne.s32.totalorder %s999_s13, %s995_s12 }
  0x2b   : > { %p1349_p11 = scmp.eq.s32.totalorder %s1140_s30, 0  ;;  %p138_p2 = scmp.eq.s32.totalorder %s1140_s30, 1 }
  0x2c   : > { %p144_p4 = scmp.eq.s32.totalorder %s583_s7, 1  ;;  %p584_p6 = scmp.ge.s32.totalorder %s1015_s17, 1 }
  0x2d   : > { %p1149_p5 = por %p1349_p11, %p61_p3  ;;  %p1157_p8 = por %p138_p2, %p55_p1 }
  0x2e   : > { %p1161_p10 = por %p144_p4, %p61_p3  ;;  %p151_p12 = scmp.lt.s32.totalorder %s1015_s17, 3 }
  0x2f   : > { %s1354_s8 = scalar_select %p1149_p5, 1, 0 }
  0x30   : > { %s1355_s28 = scalar_select %p1157_p8, 1, 0 }
  0x31   : > { %s1356_s4 = scalar_select %p1161_p10, 1, 0 }
  0x32   : > { %p1168_p13 = pnand %p584_p6, %p151_p12  ;;  %s1018_s9 = smov [#allocation6]  }
  0x33   : > { %s1172_s10 = sshll.u32 %s1018_s9, 4  ;;  %s1179_s20 = scalar_lea.hbm %s1347_s2, %s601_s25  ;;  %s164_s10 = int_to_ptr.vmem [resolvable:$true] %s1172_s10 }
  0x34   : > { %s1357_s5 = scalar_select %p1168_p13, 1, 0 }
  0x35   : > { %s867_s21 = scalar_lea.hbm %s1179_s20, 2048  ;;  %s872_s26 = scalar_lea.hbm %s1347_s2, 4096 }
  0x36   : > { %p868_p0 = scmp.ne.s32.totalorder %s1179_s20, %s867_s21  ;;  %p873_p4 = scmp.lt.u32.totalorder %s1179_s20, %s1347_s2 }
  0x37   : > { %p874_p6 = scmp.lt.u32.totalorder %s872_s26, %s867_s21  ;;  %p876_p1 = scmp.lt.u32.totalorder %s867_s21, %s1179_s20 }
  0x38   : > { %p870_p3 = pnand %p868_p0, %p839_p9 }
  0x39   : > { %p875_p12 = por %p874_p6, %p873_p4 }
  0x3a   : > { %p871_p2 = pneg %p870_p3 }
  0x3b   : > { %p877_p11 = por %p876_p1, %p875_p12 }
  0x3d   : > { %p878_p10 = pnand %p877_p11, %p871_p2 }
  0x3f   : > { %881 = shalt.err (!%p878_p10)
}
  0x40   : > { %s882_s25 = scalar_lea.vmem %s1166_s27, 2048  ;;  %s1019_s11 = smov [#allocation8]  }
  0x41   : > { %p883_p0 = scmp.ne.s32.totalorder %s1166_s27, %s882_s25  ;;  %s887_s19 = sshll.u32 %s1019_s11, 4  ;;  %s888_s19 = int_to_ptr.vmem [resolvable:$false] %s887_s19 }
  0x42   : > { %s889_s22 = scalar_lea.vmem %s888_s19, 4096  ;;  %p890_p5 = scmp.lt.s32.totalorder %s1166_s27, %s888_s19 }
  0x43   : > { %p885_p3 = pnand %p883_p0, %p839_p9  ;;  %p891_p4 = scmp.lt.s32.totalorder %s889_s22, %s882_s25 }
  0x45   : > { %p886_p8 = pneg %p885_p3  ;;  %p892_p6 = por %p891_p4, %p890_p5 }
  0x47   : > { %p893_p1 = pnand %p892_p6, %p886_p8 }
  0x49   : > { %896 = shalt.err (!%p893_p1)
}
  0x4a   : > { %s1020_s21 = smov 128   ;;  %s1021_s23 = smov 8  }
  0x4b   : > { %774 = dma.hbm_to_vmem [thread:$0]  (!%p1101_p7), %s1179_s20, 2048, %s1166_s27, %s1109_s6, %s1020_s21, %s1020_s21, %s1021_s23  }
  0x4c   : > { %p1358_p9 = scmp.eq.s32.totalorder %s1140_s30, 0  ;;  %p1359_p11 = pneg %p1168_p13 }
  0x4d   : > { %s897_s25 = scalar_lea.hbm %s1346_s1, 2048 }
  0x4e   : > { %p1211_p10 = pnand %p1359_p11, %p1358_p9  ;;  %p898_p5 = scmp.ne.s32.totalorder %s1346_s1, %s897_s25 }
  0x4f   : > { %p904_p12 = scmp.lt.u32.totalorder %s897_s25, %s1346_s1 }
  0x50   : > { %p899_p8 = pneg %p1211_p10 }
  0x52   : > { %p900_p7 = pnand %p899_p8, %p898_p5 }
  0x54   : > { %p901_p2 = pneg %p900_p7 }
  0x56   : > { %p906_p0 = pnand %p904_p12, %p901_p2 }
  0x58   : > { %909 = shalt.err (!%p906_p0)
}
  0x59   : > { %s910_s27 = scalar_lea.vmem %s164_s10, 2048  ;;  %p918_p1 = scmp.lt.s32.totalorder %s164_s10, %s164_s10 }
  0x5a   : > { %p911_p3 = scmp.ne.s32.totalorder %s164_s10, %s910_s27  ;;  %p919_p9 = scmp.lt.s32.totalorder %s910_s27, %s910_s27 }
  0x5c   : > { %p913_p4 = pnand %p911_p3, %p899_p8  ;;  %p920_p11 = por %p919_p9, %p918_p1 }
  0x5e   : > { %p914_p6 = pneg %p913_p4 }
  0x60   : > { %p921_p13 = pnand %p920_p11, %p914_p6 }
  0x62   : > { %924 = shalt.err (!%p921_p13)
}
  0x63   : > { %767 = dma.hbm_to_vmem [thread:$0]  (!%p1211_p10), %s1346_s1, 2048, %s164_s10, [#allocation7], %s1020_s21, %s1020_s21, %s1021_s23  }
  0x64   : > { %p1361_p5 = scmp.ne.s32.totalorder %s1357_s5, 0 }
  0x65   : > { %s223_s7 = sand.u32 (!%p1361_p5), 1, %s1140_s30   ;;  %s1235_s9 = sand.u32 (!%p1361_p5), 1, %s999_s13  }
  0x66   : > { %221 = sbr.rel (%p1361_p5) target bundleno = 588 (0x24c), region = 32  ;;  %s593_s25 = sshll.u32 (!%p1361_p5), %s1235_s9, 3 }
  0x67   : > { %s224_s11 = scalar_lea.sflag (!%p1361_p5), [#allocation4], %s223_s7  ;;  %s1240_s19 = scalar_lea.vmem (!%p1361_p5), [#allocation3], %s593_s25 }
  0x68   : > { %p1362_p13 = scmp.ne.s32.totalorder (!%p1361_p5), %s1354_s8, 0 }
  0x6d   : > { %978 = dma.done.wait (%p1362_p13), %s224_s11, 128  }
  0x6e   : > { %980 = vsyncadd (%p1362_p13), %s224_s11, 4294967168  ;;  %p1363_p10 = scmp.eq.s32.totalorder %s1140_s30, 0 }
  0x70   : > { %982 = dma.done.wait (%p1363_p10), [#allocation7], 2048   ;;  %p1364_p8 = pmov %p1363_p10 }
  0x71   : > { %s595_s5 = sshll.u32 %s1235_s9, 7 }
  0x72   : > { %984 = vsyncadd (%p1364_p8), [#allocation7], 4294965248  ;;  %s1251_s10 = scalar_lea.vmem [#allocation8], %s595_s5 }
  0x73   : > { %986 = dma.done.wait (%p1362_p13), %s224_s11, 2048  }
  0x74   : > { %988 = vsyncadd (%p1362_p13), %s224_s11, 4294965248  ;;  %v1022_v0 = vmov 0.0|0.0   ;;  %vm1023_vm0 = vmmov 0   ;;  %v1024_v1 = vmov 0.0   ;;  %v274_v2 = vld [vmem:[#allocation6] sm:$0xff]  ;;  %v275_v3 = vld [vmem:[#allocation6 + $0x8] sm:$0xff] }
  0x75   : > { %706 = vmatprep.subr.bf16.mxu0 %v1022_v0  ;;  %668 = vmatprep.mubr.msk.f32.mxu0 %vm1023_vm0, %v1024_v1  ;;  %v276_v4 = vld [vmem:[#allocation6 + $0x10] sm:$0xff]  ;;  %v707_v5 = vpack.c.bf16 %v275_v3, %v274_v2  ;;  %v277_v6 = vld [vmem:[#allocation6 + $0x18] sm:$0xff]  ;;  %v278_v8 = vld [vmem:[#allocation6 + $0x20] sm:$0xff]  ;;  %s267_s30 = scalar_lea.vmem [#allocation9], %s593_s25  ;;  %s598_s21 = sshll.u32 %s1007_s15, 7 }
  0x76   : > { %730 = vmatprep.subr.bf16.mxu1 %v1022_v0  ;;  %703 = vmatprep.mubr.msk.f32.mxu1 %vm1023_vm0, %v1024_v1  ;;  %v710_v7 = vpack.c.bf16 %v277_v6, %v276_v4  ;;  %v279_v9 = vld [vmem:[#allocation6 + $0x28] sm:$0xff]  ;;  %v362_v10 = vld [vmem:[%s1251_s10] sm:$0xff]  ;;  %v280_v14 = vld [vmem:[#allocation6 + $0x30] sm:$0xff]  ;;  %s465_s8 = sshll.u32 %s267_s30, 4  ;;  %s1298_s29 = scalar_lea.hbm %s1348_s3, %s598_s21  ;;  %s1293_s8 = int_to_ptr.vmem [resolvable:$true] %s465_s8 }
  0x77   : > { %708 = vmatpush3.bf16.msra.mxu0 %v707_v5  ;;  %v363_v11 = vld [vmem:[%s1251_s10 + $0x8] sm:$0xff]  ;;  %v713_v12 = vpack.c.bf16 %v279_v9, %v278_v8  ;;  %v281_v15 = vld [vmem:[#allocation6 + $0x38] sm:$0xff]  ;;  %v364_v16 = vld [vmem:[%s1251_s10 + $0x10] sm:$0xff]  ;;  %s450_s6 = scalar_lea.sflag [#allocation5], %s1235_s9  ;;  %s925_s27 = scalar_lea.vmem %s1293_s8, 128 }
  0x78   : > { %709 = vmatprep.subr.bf16.mxu0 %v1022_v0  ;;  %v731_v13 = vpack.c.bf16 %v363_v11, %v362_v10  ;;  %v365_v17 = vld [vmem:[%s1251_s10 + $0x18] sm:$0xff]  ;;  %v716_v18 = vpack.c.bf16 %v281_v15, %v280_v14  ;;  %v282_v19 = vld [vmem:[#allocation6 + $0x40] sm:$0xff]  ;;  %v283_v20 = vld [vmem:[#allocation6 + $0x48] sm:$0xff]  ;;  %p926_p7 = scmp.ne.s32.totalorder %s1293_s8, %s925_s27  ;;  %p1365_p2 = scmp.ne.s32.totalorder %s1355_s28, 0 }
  0x79   : > { %v734_v21 = vpack.c.bf16 %v365_v17, %v364_v16  ;;  %v719_v22 = vpack.c.bf16 %v283_v20, %v282_v19  ;;  %v284_v23 = vld [vmem:[#allocation6 + $0x50] sm:$0xff]  ;;  %v285_v24 = vld [vmem:[#allocation6 + $0x58] sm:$0xff]  ;;  %v366_v25 = vld [vmem:[%s1251_s10 + $0x20] sm:$0xff]  ;;  %s1025_s15 = smov [#allocation9]  }
  0x7a   : > { %732 = vmatpush3.bf16.xpose.msra.mxu1 %v731_v13  ;;  %v367_v26 = vld [vmem:[%s1251_s10 + $0x28] sm:$0xff]  ;;  %v722_v27 = vpack.c.bf16 %v285_v24, %v284_v23  ;;  %v286_v28 = vld [vmem:[#allocation6 + $0x60] sm:$0xff]  ;;  %v288_v32 = vld [vmem:[#allocation6 + $0x70] sm:$0xff]  ;;  %p927_p12 = pnand %p926_p7, %p1365_p2  ;;  %s929_s20 = sshll.u32 %s1025_s15, 4  ;;  %s930_s20 = int_to_ptr.vmem [resolvable:$false] %s929_s20 }
  0x7b   : > { %711 = vmatpush3.bf16.msra.mxu0 %v710_v7  ;;  %733 = vmatprep.subr.bf16.mxu1 %v1022_v0  ;;  %v287_v29 = vld [vmem:[#allocation6 + $0x68] sm:$0xff]  ;;  %v737_v30 = vpack.c.bf16 %v367_v26, %v366_v25  ;;  %v289_v33 = vld [vmem:[#allocation6 + $0x78] sm:$0xff]  ;;  %v368_v34 = vld [vmem:[%s1251_s10 + $0x30] sm:$0xff]  ;;  %s931_s22 = scalar_lea.vmem %s930_s20, 256  ;;  %p932_p3 = scmp.lt.s32.totalorder %s1293_s8, %s930_s20 }
  0x7c   : > { %712 = vmatprep.subr.bf16.mxu0 %v1022_v0  ;;  %v725_v31 = vpack.c.bf16 %v287_v29, %v286_v28  ;;  %v369_v35 = vld [vmem:[%s1251_s10 + $0x38] sm:$0xff]  ;;  %v728_v36 = vpack.c.bf16 %v289_v33, %v288_v32  ;;  %v370_v39 = vld [vmem:[%s1251_s10 + $0x40] sm:$0xff]  ;;  %v371_v40 = vld [vmem:[%s1251_s10 + $0x48] sm:$0xff]  ;;  %p928_p0 = pneg %p927_p12  ;;  %p933_p4 = scmp.lt.s32.totalorder %s931_s22, %s925_s27 }
  0x7d   : > { %v740_v37 = vpack.c.bf16 %v369_v35, %v368_v34  ;;  %v273_v38 = vld [vmem:[%s1240_s19] sm:$0xff]  ;;  %v743_v41 = vpack.c.bf16 %v371_v40, %v370_v39  ;;  %v374_v45 = vld [vmem:[%s1251_s10 + $0x60] sm:$0xff]  ;;  %v375_v46 = vld [vmem:[%s1251_s10 + $0x68] sm:$0xff] }
  0x7e   : > { %v372_v42 = vld [vmem:[%s1251_s10 + $0x50] sm:$0xff]  ;;  %v373_v43 = vld [vmem:[%s1251_s10 + $0x58] sm:$0xff]  ;;  %v749_v47 = vpack.c.bf16 %v375_v46, %v374_v45  ;;  %p934_p6 = por %p933_p4, %p932_p3 }
  0x7f   : > { %714 = vmatpush3.bf16.msra.mxu0 %v713_v12  ;;  %v746_v44 = vpack.c.bf16 %v373_v43, %v372_v42  ;;  %v376_v48 = vld [vmem:[%s1251_s10 + $0x70] sm:$0xff]  ;;  %v377_v49 = vld [vmem:[%s1251_s10 + $0x78] sm:$0xff] }
  0x80   : > { %715 = vmatprep.subr.bf16.mxu0 %v1022_v0  ;;  %v752_v50 = vpack.c.bf16 %v377_v49, %v376_v48  ;;  %p935_p1 = pnand %p934_p6, %p928_p0 }
  0x82   : > { %735 = vmatpush3.bf16.xpose.msra.mxu1 %v734_v21 }
  0x83   : > { %717 = vmatpush3.bf16.msra.mxu0 %v716_v18  ;;  %736 = vmatprep.subr.bf16.mxu1 %v1022_v0 }
  0x84   : > { %718 = vmatprep.subr.bf16.mxu0 %v1022_v0 }
  0x87   : > { %720 = vmatpush3.bf16.msra.mxu0 %v719_v22 }
  0x88   : > { %721 = vmatprep.subr.bf16.mxu0 %v1022_v0 }
  0x8a   : > { %738 = vmatpush3.bf16.xpose.msra.mxu1 %v737_v30 }
  0x8b   : > { %723 = vmatpush3.bf16.msra.mxu0 %v722_v27  ;;  %739 = vmatprep.subr.bf16.mxu1 %v1022_v0 }
  0x8c   : > { %724 = vmatprep.subr.bf16.mxu0 %v1022_v0 }
  0x8f   : > { %726 = vmatpush3.bf16.msra.mxu0 %v725_v31 }
  0x90   : > { %727 = vmatprep.subr.bf16.mxu0 %v1022_v0 }
  0x92   : > { %741 = vmatpush3.bf16.xpose.msra.mxu1 %v740_v37 }
  0x93   : > { %729 = vmatpush3.bf16.msra.mxu0 %v728_v36  ;;  %742 = vmatprep.subr.bf16.mxu1 %v1022_v0 }
  0x96   : > { %669 = vmatmul.mubr.f32.vlgmr.msra.gmra.mrb[0].mxu0 %v273_v38 }
  0x9a   : > { %744 = vmatpush3.bf16.xpose.msra.mxu1 %v743_v41 }
  0x9b   : > { %745 = vmatprep.subr.bf16.mxu1 %v1022_v0 }
  0xa2   : > { %747 = vmatpush3.bf16.xpose.msra.mxu1 %v746_v44 }
  0xa3   : > { %748 = vmatprep.subr.bf16.mxu1 %v1022_v0 }
  0xaa   : > { %750 = vmatpush3.bf16.xpose.msra.mxu1 %v749_v47 }
  0xab   : > { %751 = vmatprep.subr.bf16.mxu1 %v1022_v0 }
  0xb2   : > { %753 = vmatpush3.bf16.xpose.msra.mxu1 %v752_v50 }
 0x169   : > { %v356_v51 = vpop.f32.mrb[0].mxu0 }
 0x16a   : > { %v670_v52 = vpop.f32.mrb[1].mxu0  ;;  %704 = vmatmul.mubr.f32.vlgmr.msra.gmra.mrb[0].mxu1 %v356_v51 }
 0x23d   : > { %v444_v53 = vpop.f32.mrb[0].mxu1 }
 0x23e   : > { %448 = vst [vmem:[%s267_s30] sm:$0xff] %v444_v53  ;;  %v705_v54 = vpop.f32.mrb[1].mxu1 }
 0x23f   : > { %938 = shalt.err (!%p935_p1)
}
 0x240   : > { %s939_s7 = scalar_lea.hbm %s1298_s29, 128  ;;  %s943_s11 = scalar_lea.hbm %s1348_s3, 256 }
 0x241   : > { %p940_p9 = scmp.ne.s32.totalorder %s1298_s29, %s939_s7  ;;  %p944_p13 = scmp.lt.u32.totalorder %s1298_s29, %s1348_s3 }
 0x242   : > { %p945_p10 = scmp.lt.u32.totalorder %s943_s11, %s939_s7  ;;  %p947_p7 = scmp.lt.u32.totalorder %s939_s7, %s1298_s29 }
 0x243   : > { %p941_p11 = pnand %p940_p9, %p1365_p2 }
 0x244   : > { %p946_p8 = por %p945_p10, %p944_p13 }
 0x245   : > { %p942_p5 = pneg %p941_p11 }
 0x246   : > { %p948_p12 = por %p947_p7, %p946_p8 }
 0x248   : > { %p949_p0 = pnand %p948_p12, %p942_p5 }
 0x24a   : > { %952 = shalt.err (!%p949_p0)
}
 0x24b   : > { %762 = dma.vmem_to_hbm [thread:$0]  (%p1365_p2), %s1293_s8, 128, %s1298_s29, %s450_s6  }
 0x24c PF: > { %s477_s10 = sand.u32 1, %s995_s12   ;;  %p1366_p3 = scmp.ne.s32.totalorder %s1356_s4, 0 }
 0x24d   : > { %p1367_p4 = scmp.ge.s32.totalorder %s1015_s17, 2  ;;  %s478_s30 = scalar_lea.sflag [#allocation5], %s477_s10 }
 0x24f   : > { %p776_p6 = pnand %p1367_p4, %p1366_p3 }
 0x251   : > { %990 = dma.done.wait (!%p776_p6), %s478_s30, 128  }
 0x252   : > { %992 = vsyncadd (!%p776_p6), %s478_s30, 4294967168  ;;  %s20_s17 = sadd.s32 1, %s1015_s17   ;;  %s1368_s12 = smov %s999_s13 }
 0x253   : > { %p17_p1 = scmp.ge.s32.totalorder %s20_s17, 4   ;;  %s1369_s13 = smov %s1003_s14 }
 0x254   : > { %s1370_s14 = smov %s1094_s24  ;;  %s1371_s15 = smov %s1011_s16 }
 0x255   : > { %s1372_s16 = smov %s1374_s18  ;;  %19 = sbr.rel (!%p17_p1) target bundleno = 7 (0x7), region = 96 }
 0x25c   :  { %483 = vsyncpa [#allocation4], 1 }
 0x25d   :  { %485 = vsyncpa [#allocation4 + $0x1], 1 }
 0x25e   :  { %486 = vsyncpa [#allocation7], 1 }
 0x25f   :  { %487 = vsyncpa [#allocation5], 1 }
 0x260   :  { %489 = vsyncpa [#allocation5 + $0x1], 1 }

</bundles_post_ra>
